<compile_context>
chip_gen: v5e
topology: v5e:2x2
jax: 0.10.0
libtpu: 0.0.40
codegen_flags: <defaults>
</compile_context>

<pallas_src>
import jax
import jax.numpy as jnp
from jax.experimental import pallas as pl
from jax.experimental.pallas import tpu as pltpu


def _spectral_pool_kernel(mask_ref, x_ref, o_ref):
    # mask_ref: (1, HW), x_ref / o_ref: (TM, HW). Broadcast multiply on the VPU.
    o_ref[...] = x_ref[...] * mask_ref[...]


def _band_mask(n: int, topf: int, dtype) -> jax.Array:
    """1-D keep-mask: ones at the first/last `topf` entries, zeros in the middle
    band — but only when the PyTorch module would actually apply the mask."""
    if topf > 0 and n >= 2 * topf:
        idx = jnp.arange(n)
        return ((idx < topf) | (idx >= n - topf)).astype(dtype)
    return jnp.ones((n,), dtype)


def spectral_pooling_2d(x: jax.Array, gamma=(0.5, 0.5)) -> jax.Array:
    """x: (N, C, H, W). `gamma` is the constructor kwarg (the module halves it)."""
    g0, g1 = float(gamma[0]) / 2.0, float(gamma[1]) / 2.0
    n, c, h, w = x.shape
    topf_h, topf_w = int(g0 * h), int(g1 * w)

    hw = h * w
    rows = n * c
    x2d = x.reshape(rows, hw)

    mask2d = (
        _band_mask(h, topf_h, x.dtype)[:, None] * _band_mask(w, topf_w, x.dtype)[None, :]
    ).reshape(1, hw)

    # --- row tiling (v7x-safe block size, sublane-aligned for the dtype) -----
    itemsize = jnp.dtype(x.dtype).itemsize
    sublane = {4: 8, 2: 16, 1: 32}.get(itemsize, 8)
    target_block_bytes = 4 * 1024 * 1024  # 2 refs x 2 bufs x 4 MiB = 16 MiB VMEM
    tm = max(sublane, target_block_bytes // max(1, hw * itemsize))
    if tm >= rows:
        tm = rows                               # full-extent block dim is always legal
    else:
        tm = max(sublane, (tm // sublane) * sublane)
    grid = (pl.cdiv(rows, tm),)

    out2d = pl.pallas_call(
        _spectral_pool_kernel,
        out_shape=jax.ShapeDtypeStruct((rows, hw), x.dtype),
        grid=grid,
        in_specs=[
            pl.BlockSpec((1, hw), lambda i: (0, 0)),   # mask: same tiny block each step
            pl.BlockSpec((tm, hw), lambda i: (i, 0)),  # x: row tile
        ],
        out_specs=pl.BlockSpec((tm, hw), lambda i: (i, 0)),
        input_output_aliases={1: 0},                   # output reuses x2d's HBM buffer
        cost_estimate=pl.CostEstimate(
            flops=rows * hw,
            transcendentals=0,
            bytes_accessed=(2 * rows * hw + hw) * itemsize,
        ),
        compiler_params=pltpu.CompilerParams(
            dimension_semantics=("parallel",),
            vmem_limit_bytes=32 * 1024 * 1024,
        ),
    )(mask2d, x2d)

    return out2d.reshape(n, c, h, w)


def spectral_pooling_2d_reference(x: jax.Array, gamma=(0.5, 0.5)) -> jax.Array:
    """Pure-JAX reference mirroring the PyTorch forward exactly."""
    g0, g1 = float(gamma[0]) / 2.0, float(gamma[1]) / 2.0
    n, c, h, w = x.shape
    topf = (int(g0 * h), int(g1 * w))
    out = x
    if topf[0] > 0 and h >= 2 * topf[0]:
        m = jnp.concatenate(
            [jnp.ones(topf[0]), jnp.zeros(h - 2 * topf[0]), jnp.ones(topf[0])]
        ).astype(x.dtype)
        out = out * m.reshape(1, 1, h, 1)
    if topf[1] > 0 and w >= 2 * topf[1]:
        m = jnp.concatenate(
            [jnp.ones(topf[1]), jnp.zeros(w - 2 * topf[1]), jnp.ones(topf[1])]
        ).astype(x.dtype)
        out = out * m.reshape(1, 1, 1, w)
    return out


if __name__ == "__main__":
    key = jax.random.PRNGKey(0)
    # N=2, C=4, H=W=16; gamma=(0.5, 0.5) -> module halves it -> topf=(4, 4):
    # keep the first/last 4 rows and columns, zero the middle 8x8 band.
    x = jax.random.normal(key, (2, 4, 16, 16), dtype=jnp.float32)
    gamma = (0.5, 0.5)

    out = jax.block_until_ready(spectral_pooling_2d(x, gamma))
    ref = spectral_pooling_2d_reference(x, gamma)

    assert out.shape == ref.shape and out.dtype == ref.dtype
    assert jnp.allclose(out, ref), "Pallas SpectralPooling2D mismatch vs reference"

    # Also exercise the pass-through branch (empty band -> identity).
    out_id = jax.block_until_ready(spectral_pooling_2d(x, (0.0, 0.0)))
    assert jnp.allclose(out_id, x), "identity branch mismatch"

    print("KERNEL_OK")
</pallas_src>

<mosaic_0001>
module attributes {stable_mosaic.version = 11 : i64} {
  func.func @_spectral_pool_kernel(%arg0: i32, %arg1: memref<1x256xf32, #tpu.memory_space<vmem>>, %arg2: memref<8x256xf32, #tpu.memory_space<vmem>>, %arg3: memref<8x256xf32, #tpu.memory_space<vmem>>) attributes {dimension_semantics = [#tpu.dimension_semantics<parallel>], iteration_bounds = array<i64: 1>, scalar_prefetch = 0 : i64, scratch_operands = 0 : i64, tpu.core_type = #tpu.core_type<tc>, window_params = [{pipeline_mode = #tpu.pipeline_mode<synchronous>, transform_indices = @transform_0, window_bounds = array<i64: 1, 256>}, {transform_indices = @transform_1, window_bounds = array<i64: 8, 256>}, {transform_indices = @transform_2, window_bounds = array<i64: 8, 256>}]} {
    %c0 = arith.constant 0 : index
    %c0_0 = arith.constant 0 : index
    %0 = vector.load %arg2[%c0, %c0_0] : memref<8x256xf32, #tpu.memory_space<vmem>>, vector<8x256xf32>
    %c0_1 = arith.constant 0 : index
    %c0_2 = arith.constant 0 : index
    %1 = vector.load %arg1[%c0_1, %c0_2] : memref<1x256xf32, #tpu.memory_space<vmem>>, vector<1x256xf32>
    %2 = vector.broadcast %1 : vector<1x256xf32> to vector<8x256xf32>
    %3 = arith.mulf %0, %2 : vector<8x256xf32>
    %c0_3 = arith.constant 0 : index
    %c0_4 = arith.constant 0 : index
    %4 = vector.load %arg3[%c0_3, %c0_4] : memref<8x256xf32, #tpu.memory_space<vmem>>, vector<8x256xf32>
    tpu.vector_store %arg3[%c0_3, %c0_4], %3 {strides = array<i32>} : memref<8x256xf32, #tpu.memory_space<vmem>>, vector<8x256xf32>,
    return
  }
  func.func @transform_0(%arg0: i32) -> (i32, i32) {
    %c0_i32 = arith.constant 0 : i32
    %c0_i32_0 = arith.constant 0 : i32
    %c0_i32_1 = arith.constant 0 : i32
    return %c0_i32, %c0_i32_0 : i32, i32
  }
  func.func @transform_1(%arg0: i32) -> (i32, i32) {
    %c0_i32 = arith.constant 0 : i32
    %c0_i32_0 = arith.constant 0 : i32
    return %arg0, %c0_i32 : i32, i32
  }
  func.func @transform_2(%arg0: i32) -> (i32, i32) {
    %c0_i32 = arith.constant 0 : i32
    %c0_i32_0 = arith.constant 0 : i32
    return %arg0, %c0_i32 : i32, i32
  }
}

</mosaic_0001>

<bundles_post_ra>
// kernel: tpu_custom_call.1
= control target key start
LH: loop header
LB: loop body
LE: loop exit
PB: predicated region body
PF: predicated region fallthrough
CT: control target
= control target key end

     0   :  { %7 = vsyncpa [#allocation3], 0  ;;  %s135_s0 = inlined_call_operand.vmem [shape: f32[1,256], index: 0, kind: input, shape index: {}]   ;;  %s136_s1 = inlined_call_operand.hbm [shape: f32[8,256], index: 1, kind: input, shape index: {}, may-alias: {1,2}]   ;;  %s137_s2 = inlined_call_operand.hbm [shape: f32[8,256], index: 2, kind: output, shape index: {}, may-alias: {1,2}]  }
   0x1   :  { %8 = vsyncpa [#allocation4], 0  ;;  %s16_s11 = sshll.u32 %s136_s1, 4  ;;  %s109_s12 = smov [#allocation2]   ;;  %s17_s11 = int_to_ptr.hbm [resolvable:$true] %s16_s11 }
   0x2   :  { %s18_s13 = sshll.u32 %s109_s12, 4  ;;  %s19_s13 = int_to_ptr.vmem [resolvable:$true] %s18_s13 }
   0x3   :  { %21 = dma.hbm_to_vmem [thread:$0]  %s17_s11, 256, %s19_s13, [#allocation3]  }
   0x4   :  { %105 = dma.done.wait [#allocation3], 256  }
   0x5   :  { %106 = vsyncadd [#allocation3], 4294967040  ;;  %v26_v0 = vld [vmem:[#allocation2] sm:$0xff]  ;;  %v27_v2 = vld [vmem:[#allocation2 + $0x8] sm:$0xff]  ;;  %s110_s16 = smov [#allocation5]   ;;  %s45_s1 = sshll.u32 %s137_s2, 4  ;;  %s46_s1 = int_to_ptr.hbm [resolvable:$true] %s45_s1 }
   0x6   :  { %v28_v1 = vld [vmem:[%s135_s0] sm:$0x3]  ;;  %s43_s17 = sshll.u32 %s110_s16, 4  ;;  %s44_s17 = int_to_ptr.vmem [resolvable:$true] %s43_s17 }
   0x7   :  { %v30_v3 = vperm.slane %v28_v1, 0  ;;  %v31_v4 = vperm.slane %v28_v1, 1 }
   0x9   :  { %v34_v5 = vmul.f32 %v30_v3, %v26_v0  ;;  %v35_v6 = vmul.f32 %v31_v4, %v27_v2 }
   0xb   :  { %36 = vst [vmem:[#allocation5] sm:$0xff] %v34_v5 }
   0xc   :  { %37 = vst [vmem:[#allocation5 + $0x8] sm:$0xff] %v35_v6 }
   0xd   :  { %48 = dma.vmem_to_hbm [thread:$0]  %s44_s17, 256, %s46_s1, [#allocation4]  }
   0xe   :  { %107 = dma.done.wait [#allocation4], 256  }
   0xf   :  { %108 = vsyncadd [#allocation4], 4294967040 }
  0x10   :  { %53 = vsyncpa [#allocation3], 1 }
  0x11   :  { %54 = vsyncpa [#allocation4], 1 }

</bundles_post_ra>
